<compile_context>
chip_gen: v5e
topology: v5e:2x2
jax: 0.10.0
libtpu: 0.0.40
codegen_flags: <defaults>
</compile_context>

<pallas_src>
from types import SimpleNamespace

import numpy as np

import jax
import jax.numpy as jnp
from jax.experimental import pallas as pl
from jax.experimental.pallas import tpu as pltpu


def _round_up(x, m):
    return ((x + m - 1) // m) * m


# ----------------------------------------------------------------------------
# fused kernel: whole batch in one step, one packed lane-dense output slab
# ----------------------------------------------------------------------------
def _postprocess_kernel(obj_ref, attn_ref, sp_ref, ct_ref, out_ref):
    # obj_ref : (R, C+1)   object logits (classes on lanes)
    # attn_ref: (R, A+1)   attention logits
    # sp_ref  : (R, S)     spatial logits
    # ct_ref  : (R, CT)    contacting logits
    # out_ref : (R, Cpad)  packed: [score | label | attn(A+1) | spatial | contact | pad]
    ol = obj_ref[...].astype(jnp.float32)
    R, c1 = ol.shape

    # ---- object classification: full-class softmax, foreground max/argmax ---
    m = jnp.max(ol, axis=-1, keepdims=True)
    e = jnp.exp(ol - m)
    probs = e * pl.reciprocal(jnp.sum(e, axis=-1, keepdims=True), approx=False)

    col = jax.lax.broadcasted_iota(jnp.int32, (R, c1), 1)
    fg = col < (c1 - 1)                                   # drop background class
    fg_probs = jnp.where(fg, probs, -1.0)
    scores = jnp.max(fg_probs, axis=-1, keepdims=True)    # (R, 1)
    hit = jnp.logical_and(fg_probs == scores, fg)
    # first arg-max index (ties break low, matching torch), emitted as f32
    labels = jnp.min(jnp.where(hit, col.astype(jnp.float32), float(c1)),
                     axis=-1, keepdims=True)              # (R, 1)

    # ---- attention: softmax over first A classes (background lane -> exact 0)
    al = attn_ref[...].astype(jnp.float32)
    a1 = al.shape[-1]
    acol = jax.lax.broadcasted_iota(jnp.int32, al.shape, 1)
    keep = acol < (a1 - 1)
    alm = jnp.where(keep, al, -1e30)
    am = jnp.max(alm, axis=-1, keepdims=True)
    ae = jnp.exp(alm - am)                                # masked lane exps to exactly 0
    ap = ae * pl.reciprocal(jnp.sum(ae, axis=-1, keepdims=True), approx=False)

    # ---- sigmoid distributions ----------------------------------------------
    sp = jax.nn.sigmoid(sp_ref[...].astype(jnp.float32))
    ct = jax.nn.sigmoid(ct_ref[...].astype(jnp.float32))
    ns = sp.shape[-1]
    nc = ct.shape[-1]

    # ---- pack everything into one lane-dense slab ----------------------------
    out_ref[...] = jnp.zeros_like(out_ref)                # zero pad lanes once
    out_ref[:, 0:1] = scores
    out_ref[:, 1:2] = labels
    out_ref[:, 2:2 + a1] = ap
    out_ref[:, 2 + a1:2 + a1 + ns] = sp
    out_ref[:, 2 + a1 + ns:2 + a1 + ns + nc] = ct


@jax.jit
def _postprocess_pallas(obj_logits, attn_logits, spatial_logits, contacting_logits):
    B, Q, c1 = obj_logits.shape
    a1 = attn_logits.shape[-1]
    ns = spatial_logits.shape[-1]
    nc = contacting_logits.shape[-1]
    R = B * Q
    used = 2 + a1 + ns + nc
    cpad = _round_up(used, 128)

    # contiguous reshapes only (layout plumbing); native dtypes DMA'd as-is
    obj2d = obj_logits.reshape(R, c1)
    attn2d = attn_logits.reshape(R, a1)
    sp2d = spatial_logits.reshape(R, ns)
    ct2d = contacting_logits.reshape(R, nc)

    in_bytes = sum(int(x.size) * x.dtype.itemsize for x in (obj2d, attn2d, sp2d, ct2d))
    out_bytes = R * cpad * 4
    cost = pl.CostEstimate(
        flops=8 * R * (c1 + a1 + ns + nc),
        transcendentals=R * (c1 + a1 + ns + nc),
        bytes_accessed=in_bytes + out_bytes)

    return pl.pallas_call(
        _postprocess_kernel,
        out_shape=jax.ShapeDtypeStruct((R, cpad), jnp.float32),
        in_specs=[pl.BlockSpec(memory_space=pltpu.MemorySpace.VMEM)] * 4,
        out_specs=pl.BlockSpec(memory_space=pltpu.MemorySpace.VMEM),
        cost_estimate=cost,
    )(obj2d, attn2d, sp2d, ct2d)


# ----------------------------------------------------------------------------
# PostProcessDSGG (JAX / Pallas)
# ----------------------------------------------------------------------------
class PostProcessDSGGPallas:
    def __init__(self, args):
        # kept for parity with the PyTorch module; not used in this forward
        self.subject_category_id = args.subject_category_id
        self.use_matching = args.use_matching

    def device_forward(self, outputs):
        """One fused pallas_call over the whole batch (single grid step)."""
        return _postprocess_pallas(
            outputs["pred_obj_logits"], outputs["pred_attn_logits"],
            outputs["pred_spatial_logits"], outputs["pred_contacting_logits"])

    def finalize(self, packed, outputs, target_sizes):
        # TODO(synk): per-frame Python dict / pair_idx packaging has no Pallas
        # equivalent (it is .cpu().numpy() glue in the original) -> host numpy.
        out_obj_logits = outputs["pred_obj_logits"]
        assert len(out_obj_logits) == len(target_sizes)
        assert target_sizes.shape[1] == 2

        B, Q, _ = out_obj_logits.shape
        a1 = outputs["pred_attn_logits"].shape[-1]
        ns = outputs["pred_spatial_logits"].shape[-1]
        nc = outputs["pred_contacting_logits"].shape[-1]

        p = np.asarray(packed)                              # (B*Q, Cpad)
        scores = p[:, 0].reshape(B, Q)
        labels = p[:, 1].reshape(B, Q)                      # float labels (see notes)
        off = 2
        attn = p[:, off:off + a1 - 1].reshape(B, Q, a1 - 1)  # drop zeroed bg column
        off += a1
        spatial = p[:, off:off + ns].reshape(B, Q, ns)
        off += ns
        contact = p[:, off:off + nc].reshape(B, Q, nc)

        # box concat is pure data movement -> host numpy (removed from kernel)
        out_boxes = np.concatenate(
            [np.asarray(outputs["pred_sub_boxes"]),
             np.asarray(outputs["pred_obj_boxes"])], axis=1)

        ones = np.ones(Q, dtype=np.float32)
        pair_idx = np.concatenate(
            [np.arange(Q)[:, None], np.arange(Q, 2 * Q)[:, None]], axis=1)

        results = []
        for b in range(B):
            results.append({
                "pred_scores": np.concatenate([ones, scores[b]]),
                "pred_labels": np.concatenate([ones, labels[b]]),
                "pred_boxes": out_boxes[b],
                "pair_idx": pair_idx,
                "attention_distribution": attn[b],
                "spatial_distribution": spatial[b],
                "contacting_distribution": contact[b],
            })
        return results

    def __call__(self, outputs, target_sizes):
        packed = jax.block_until_ready(self.device_forward(outputs))
        return self.finalize(packed, outputs, target_sizes)


# ----------------------------------------------------------------------------
# main: deterministic synthetic inputs, run once, verify vs pure-JAX reference
# ----------------------------------------------------------------------------
if __name__ == "__main__":
    key = jax.random.PRNGKey(0)
    B, Q = 2, 16
    num_obj_classes = 12          # +1 background -> 13 logits
    n_attn, n_spatial, n_contact = 3, 6, 17

    ks = jax.random.split(key, 8)
    outputs = {
        "pred_obj_logits": jax.random.normal(ks[0], (B, Q, num_obj_classes + 1), jnp.float32),
        "pred_attn_logits": jax.random.normal(ks[1], (B, Q, n_attn + 1), jnp.float32),
        "pred_spatial_logits": jax.random.normal(ks[2], (B, Q, n_spatial), jnp.float32),
        "pred_contacting_logits": jax.random.normal(ks[3], (B, Q, n_contact), jnp.float32),
        "pred_sub_boxes": jax.nn.sigmoid(jax.random.normal(ks[4], (B, Q, 4), jnp.float32)),
        "pred_obj_boxes": jax.nn.sigmoid(jax.random.normal(ks[5], (B, Q, 4), jnp.float32)),
    }
    target_sizes = jnp.tile(jnp.asarray([[480.0, 640.0]], jnp.float32), (B, 1))

    post = PostProcessDSGGPallas(SimpleNamespace(subject_category_id=1, use_matching=False))

    # run the fused kernel once and block on the device result
    packed = jax.block_until_ready(post.device_forward(outputs))
    results = post.finalize(packed, outputs, target_sizes)

    # ---- pure-JAX reference check ------------------------------------------
    obj_prob = np.asarray(jax.nn.softmax(outputs["pred_obj_logits"], axis=-1))
    ref_scores = obj_prob[..., :-1].max(-1)
    ref_labels = obj_prob[..., :-1].argmax(-1).astype(np.float32)
    ref_attn = np.asarray(jax.nn.softmax(outputs["pred_attn_logits"][..., :-1], axis=-1))
    ref_spatial = np.asarray(jax.nn.sigmoid(outputs["pred_spatial_logits"]))
    ref_contact = np.asarray(jax.nn.sigmoid(outputs["pred_contacting_logits"]))
    ref_boxes = np.asarray(jnp.concatenate(
        [outputs["pred_sub_boxes"], outputs["pred_obj_boxes"]], axis=1))

    assert len(results) == B
    for b, r in enumerate(results):
        np.testing.assert_allclose(r["pred_scores"][:Q], np.ones(Q, np.float32))
        np.testing.assert_allclose(r["pred_scores"][Q:], ref_scores[b], rtol=1e-5, atol=1e-6)
        np.testing.assert_allclose(r["pred_labels"][Q:], ref_labels[b], atol=0)
        np.testing.assert_allclose(r["attention_distribution"], ref_attn[b], rtol=1e-5, atol=1e-6)
        np.testing.assert_allclose(r["spatial_distribution"], ref_spatial[b], rtol=1e-5, atol=1e-6)
        np.testing.assert_allclose(r["contacting_distribution"], ref_contact[b], rtol=1e-5, atol=1e-6)
        np.testing.assert_allclose(r["pred_boxes"], ref_boxes[b], rtol=1e-6, atol=1e-7)
        assert r["pair_idx"].shape == (Q, 2)
        for v in r.values():
            assert np.isfinite(np.asarray(v, dtype=np.float64)).all()

    print("KERNEL_OK")
</pallas_src>

<mosaic_0001>
module attributes {stable_mosaic.version = 11 : i64} {
  func.func @_postprocess_kernel(%arg0: memref<32x13xf32, #tpu.memory_space<vmem>>, %arg1: memref<32x4xf32, #tpu.memory_space<vmem>>, %arg2: memref<32x6xf32, #tpu.memory_space<vmem>>, %arg3: memref<32x17xf32, #tpu.memory_space<vmem>>, %arg4: memref<32x128xf32, #tpu.memory_space<vmem>>) attributes {dimension_semantics = [], scalar_prefetch = 0 : i64, scratch_operands = 0 : i64, tpu.core_type = #tpu.core_type<tc>} {
    %c0 = arith.constant 0 : index
    %c0_0 = arith.constant 0 : index
    %0 = vector.load %arg0[%c0, %c0_0] : memref<32x13xf32, #tpu.memory_space<vmem>>, vector<32x13xf32>
    %cst = arith.constant dense<0xFF800000> : vector<32xf32>
    %1 = vector.multi_reduction <maximumf>, %0, %cst [1] : vector<32x13xf32> to vector<32xf32>
    %2 = vector.shape_cast %1 : vector<32xf32> to vector<32x1xf32>
    %3 = vector.broadcast %2 : vector<32x1xf32> to vector<32x13xf32>
    %4 = arith.subf %0, %3 : vector<32x13xf32>
    %5 = math.exp %4 : vector<32x13xf32>
    %cst_1 = arith.constant dense<0.000000e+00> : vector<32xf32>
    %6 = vector.multi_reduction <add>, %5, %cst_1 [1] : vector<32x13xf32> to vector<32xf32>
    %7 = vector.shape_cast %6 : vector<32xf32> to vector<32x1xf32>
    %8 = tpu.reciprocal %7 : vector<32x1xf32> -> vector<32x1xf32>
    %9 = vector.broadcast %8 : vector<32x1xf32> to vector<32x13xf32>
    %10 = arith.mulf %5, %9 : vector<32x13xf32>
    %11 = tpu.iota {dimensions = array<i32: 1>} : vector<32x13xi32>
    %c12_i32 = arith.constant 12 : i32
    %12 = vector.broadcast %c12_i32 : i32 to vector<32x13xi32>
    %13 = arith.cmpi slt, %11, %12 : vector<32x13xi32>
    %cst_2 = arith.constant -1.000000e+00 : f32
    %14 = vector.broadcast %cst_2 : f32 to vector<32x13xf32>
    %15 = arith.select %13, %10, %14 : vector<32x13xi1>, vector<32x13xf32>
    %cst_3 = arith.constant dense<0xFF800000> : vector<32xf32>
    %16 = vector.multi_reduction <maximumf>, %15, %cst_3 [1] : vector<32x13xf32> to vector<32xf32>
    %17 = vector.shape_cast %16 : vector<32xf32> to vector<32x1xf32>
    %18 = vector.broadcast %17 : vector<32x1xf32> to vector<32x13xf32>
    %19 = arith.cmpf oeq, %15, %18 : vector<32x13xf32>
    %20 = arith.andi %19, %13 : vector<32x13xi1>
    %21 = arith.sitofp %11 : vector<32x13xi32> to vector<32x13xf32>
    %cst_4 = arith.constant 1.300000e+01 : f32
    %22 = vector.broadcast %cst_4 : f32 to vector<32x13xf32>
    %23 = arith.select %20, %21, %22 : vector<32x13xi1>, vector<32x13xf32>
    %cst_5 = arith.constant dense<0x7F800000> : vector<32xf32>
    %24 = vector.multi_reduction <minimumf>, %23, %cst_5 [1] : vector<32x13xf32> to vector<32xf32>
    %25 = vector.shape_cast %24 : vector<32xf32> to vector<32x1xf32>
    %c0_6 = arith.constant 0 : index
    %c0_7 = arith.constant 0 : index
    %26 = vector.load %arg1[%c0_6, %c0_7] : memref<32x4xf32, #tpu.memory_space<vmem>>, vector<32x4xf32>
    %27 = tpu.iota {dimensions = array<i32: 1>} : vector<32x4xi32>
    %c3_i32 = arith.constant 3 : i32
    %28 = vector.broadcast %c3_i32 : i32 to vector<32x4xi32>
    %29 = arith.cmpi slt, %27, %28 : vector<32x4xi32>
    %cst_8 = arith.constant -1.000000e+30 : f32
    %30 = vector.broadcast %cst_8 : f32 to vector<32x4xf32>
    %31 = arith.select %29, %26, %30 : vector<32x4xi1>, vector<32x4xf32>
    %cst_9 = arith.constant dense<0xFF800000> : vector<32xf32>
    %32 = vector.multi_reduction <maximumf>, %31, %cst_9 [1] : vector<32x4xf32> to vector<32xf32>
    %33 = vector.shape_cast %32 : vector<32xf32> to vector<32x1xf32>
    %34 = vector.broadcast %33 : vector<32x1xf32> to vector<32x4xf32>
    %35 = arith.subf %31, %34 : vector<32x4xf32>
    %36 = math.exp %35 : vector<32x4xf32>
    %cst_10 = arith.constant dense<0.000000e+00> : vector<32xf32>
    %37 = vector.multi_reduction <add>, %36, %cst_10 [1] : vector<32x4xf32> to vector<32xf32>
    %38 = vector.shape_cast %37 : vector<32xf32> to vector<32x1xf32>
    %39 = tpu.reciprocal %38 : vector<32x1xf32> -> vector<32x1xf32>
    %40 = vector.broadcast %39 : vector<32x1xf32> to vector<32x4xf32>
    %41 = arith.mulf %36, %40 : vector<32x4xf32>
    %c0_11 = arith.constant 0 : index
    %c0_12 = arith.constant 0 : index
    %42 = vector.load %arg2[%c0_11, %c0_12] : memref<32x6xf32, #tpu.memory_space<vmem>>, vector<32x6xf32>
    %43 = arith.negf %42 : vector<32x6xf32>
    %44 = math.exp %43 : vector<32x6xf32>
    %cst_13 = arith.constant 1.000000e+00 : f32
    %45 = vector.broadcast %cst_13 : f32 to vector<32x6xf32>
    %46 = arith.addf %45, %44 : vector<32x6xf32>
    %47 = arith.divf %45, %46 : vector<32x6xf32>
    %c0_14 = arith.constant 0 : index
    %c0_15 = arith.constant 0 : index
    %48 = vector.load %arg3[%c0_14, %c0_15] : memref<32x17xf32, #tpu.memory_space<vmem>>, vector<32x17xf32>
    %49 = arith.negf %48 : vector<32x17xf32>
    %50 = math.exp %49 : vector<32x17xf32>
    %cst_16 = arith.constant 1.000000e+00 : f32
    %51 = vector.broadcast %cst_16 : f32 to vector<32x17xf32>
    %52 = arith.addf %51, %50 : vector<32x17xf32>
    %53 = arith.divf %51, %52 : vector<32x17xf32>
    %cst_17 = arith.constant 0.000000e+00 : f32
    %54 = vector.broadcast %cst_17 : f32 to vector<32x128xf32>
    %c0_18 = arith.constant 0 : index
    %c0_19 = arith.constant 0 : index
    %55 = vector.load %arg4[%c0_18, %c0_19] : memref<32x128xf32, #tpu.memory_space<vmem>>, vector<32x128xf32>
    tpu.vector_store %arg4[%c0_18, %c0_19], %54 {strides = array<i32>} : memref<32x128xf32, #tpu.memory_space<vmem>>, vector<32x128xf32>,
    %c0_20 = arith.constant 0 : index
    %c0_21 = arith.constant 0 : index
    %56 = vector.load %arg4[%c0_20, %c0_21] : memref<32x128xf32, #tpu.memory_space<vmem>>, vector<32x1xf32>
    tpu.vector_store %arg4[%c0_20, %c0_21], %17 {strides = array<i32>} : memref<32x128xf32, #tpu.memory_space<vmem>>, vector<32x1xf32>,
    %c0_22 = arith.constant 0 : index
    %c1 = arith.constant 1 : index
    %57 = vector.load %arg4[%c0_22, %c1] : memref<32x128xf32, #tpu.memory_space<vmem>>, vector<32x1xf32>
    tpu.vector_store %arg4[%c0_22, %c1], %25 {strides = array<i32>} : memref<32x128xf32, #tpu.memory_space<vmem>>, vector<32x1xf32>,
    %c0_23 = arith.constant 0 : index
    %c2 = arith.constant 2 : index
    %58 = vector.load %arg4[%c0_23, %c2] : memref<32x128xf32, #tpu.memory_space<vmem>>, vector<32x4xf32>
    tpu.vector_store %arg4[%c0_23, %c2], %41 {strides = array<i32>} : memref<32x128xf32, #tpu.memory_space<vmem>>, vector<32x4xf32>,
    %c0_24 = arith.constant 0 : index
    %c6 = arith.constant 6 : index
    %59 = vector.load %arg4[%c0_24, %c6] : memref<32x128xf32, #tpu.memory_space<vmem>>, vector<32x6xf32>
    tpu.vector_store %arg4[%c0_24, %c6], %47 {strides = array<i32>} : memref<32x128xf32, #tpu.memory_space<vmem>>, vector<32x6xf32>,
    %c0_25 = arith.constant 0 : index
    %c12 = arith.constant 12 : index
    %60 = vector.load %arg4[%c0_25, %c12] : memref<32x128xf32, #tpu.memory_space<vmem>>, vector<32x17xf32>
    tpu.vector_store %arg4[%c0_25, %c12], %53 {strides = array<i32>} : memref<32x128xf32, #tpu.memory_space<vmem>>, vector<32x17xf32>,
    return
  }
}

</mosaic_0001>

<bundles_post_ra>
// kernel: _postprocess_pallas.1
= control target key start
LH: loop header
LB: loop body
LE: loop exit
PB: predicated region body
PF: predicated region fallthrough
CT: control target
= control target key end

     0   :  { %vm22_vm0 = vcmask 105472   ;;  %v119_v2 = vlaneseq  ;;  %vm172_vm1 = vcmask 31744   ;;  %s1029_s0 = inlined_call_operand.vmem [shape: f32[32,13], index: 0, kind: input, shape index: {}]   ;;  %s1030_s1 = inlined_call_operand.vmem [shape: f32[32,4], index: 1, kind: input, shape index: {}]   ;;  %s1031_s2 = inlined_call_operand.vmem [shape: f32[32,6], index: 2, kind: input, shape index: {}]   ;;  %s1032_s3 = inlined_call_operand.vmem [shape: f32[32,17], index: 3, kind: input, shape index: {}]   ;;  %s1033_s4 = inlined_call_operand.hbm [shape: f32[32,128], index: 4, kind: output, shape index: {}]  }
   0x1   :  { %v664_v0 = vld [vmem:[%s1029_s0 + $0x10] sm:$0xff]  ;;  %v669_v1 = vld [vmem:[%s1029_s0] sm:$0xff]  ;;  %v270_v7 = vld [vmem:[%s1031_s2 + $0x8] sm:$0xff] }
   0x2   :  { %v29_v3 = vsel %vm22_vm0, %v664_v0, -inf  ;;  %v23_v4 = vsel %vm22_vm0, %v669_v1, -inf  ;;  %v675_v5 = vand.u32 127, %v119_v2  ;;  %v163_v6 = vld [vmem:[%s1030_s1] sm:$0xff]  ;;  %v525_v8 = vmul.f32 -1.442695, %v270_v7 }
   0x3   :  { %30 = vmax.xlane.f32.xlu1 %v29_v3  ;;  %24 = vmax.xlane.f32.xlu0 %v23_v4 }
   0x4   :  { %9 = vsyncpa [#allocation3], 0  ;;  %vm167_vm2 = vcmp.lt.s32.totalorder %v675_v5, 3  ;;  %v687_v9 = vld [vmem:[%s1029_s0 + $0x18] sm:$0xff]  ;;  %v692_v10 = vld [vmem:[%s1029_s0 + $0x8] sm:$0xff]  ;;  %539 = vpow2.f32 %v525_v8  ;;  %s630_s13 = smov 12  }
   0x5   :  { %v696_v11 = vsel %vm167_vm2, %v163_v6, -1e+30  ;;  %v164_v13 = vld [vmem:[%s1030_s1 + $0x8] sm:$0xff]  ;;  %v32_v14 = vsel %vm22_vm0, %v687_v9, -inf  ;;  %v26_v15 = vsel %vm22_vm0, %v692_v10, -inf  ;;  %v165_v16 = vld [vmem:[%s1030_s1 + $0x10] sm:$0xff] }
   0x6   :  { %v173_v12 = vsel %vm172_vm1, %v696_v11, -inf  ;;  %v166_v17 = vld [vmem:[%s1030_s1 + $0x18] sm:$0xff]  ;;  %v715_v18 = vsel %vm167_vm2, %v164_v13, -1e+30  ;;  %v719_v20 = vsel %vm167_vm2, %v165_v16, -1e+30 }
   0x7   :  { %174 = vmax.xlane.f32.xlu2 %v173_v12  ;;  %v723_v21 = vsel %vm167_vm2, %v166_v17, -1e+30  ;;  %v269_v22 = vld [vmem:[%s1031_s2] sm:$0xff]  ;;  %v176_v24 = vsel %vm172_vm1, %v715_v18, -inf  ;;  %v179_v28 = vsel %vm172_vm1, %v719_v20, -inf  ;;  %v272_v30 = vld [vmem:[%s1031_s2 + $0x18] sm:$0xff] }
   0x8   :  { %v349_v23 = vld [vmem:[%s1032_s3] sm:$0xff]  ;;  %v524_v26 = vmul.f32 -1.442695, %v269_v22  ;;  %v182_v29 = vsel %vm172_vm1, %v723_v21, -inf  ;;  %v271_v31 = vld [vmem:[%s1031_s2 + $0x10] sm:$0xff]  ;;  %s629_s2 = smov 6  }
   0x9   :  { %v528_v27 = vmul.f32 -1.442695, %v349_v23  ;;  %v527_v33 = vmul.f32 -1.442695, %v272_v30  ;;  %v526_v34 = vmul.f32 -1.442695, %v271_v31 }
   0xa   :  { %v540_v19 = vpop.eup %539  ;;  %s632_s14 = smov 2   ;;  %s512_s24 = sshll.u32 %s1033_s4, 4  ;;  %s513_s24 = int_to_ptr.hbm [resolvable:$true] %s512_s24 }
   0xb   :  { %33 = vmax.xlane.f32.xlu1 %v32_v14  ;;  %27 = vmax.xlane.f32.xlu0 %v26_v15  ;;  %v286_v25 = vadd.f32 1.0, %v540_v19  ;;  %s634_s25 = smov 128   ;;  %s635_s26 = smov 8  }
   0xd   :  { %541 = vrcp.f32 %v286_v25  ;;  %vm309_vm3 = vweird.f32 %v286_v25  ;;  %v315_v46 = vand.u32 2147483648, %v286_v25  ;;  %v313_v50 = vand.u32 2147483647, %v286_v25 }
   0xe   :  { %543 = vpow2.f32 %v524_v26 }
   0xf   :  { %177 = vmax.xlane.f32.xlu2 %v176_v24  ;;  %545 = vpow2.f32 %v528_v27  ;;  %v316_v57 = vor.u32 1.1754944e-38, %v315_v46  ;;  %vm314_vm8 = vcmp.eq.f32.partialorder %v313_v50, 8.507059e+37 }
  0x10   :  { %547 = vpow2.f32 %v527_v33 }
  0x11   :  { %549 = vpow2.f32 %v526_v34 }
  0x13   :  { %180 = vmax.xlane.f32.xlu0 %v179_v28  ;;  %183 = vmax.xlane.f32.xlu1 %v182_v29  ;;  %v542_v32 = vpop.eup %541 }
  0x14   :  { %v544_v35 = vpop.eup %543  ;;  %v305_v36 = vmul.f32 %v542_v32, %v286_v25  ;;  %vm310_vm4 = vweird.f32 %v542_v32 }
  0x15   :  { %v546_v37 = vpop.eup %545  ;;  %v285_v38 = vadd.f32 1.0, %v544_v35  ;;  %vm750_vm5 = vmor %vm309_vm3, %vm310_vm4 }
  0x16   :  { %v306_v39 = vsub.f32 1.0, %v305_v36  ;;  %v743_v40 = vadd.f32 1.0, %v546_v37  ;;  %v548_v42 = vpop.eup %547 }
  0x17   :  { %551 = vrcp.f32 %v285_v38  ;;  %v550_v43 = vpop.eup %549  ;;  %v288_v44 = vadd.f32 1.0, %v548_v42  ;;  %vm294_vm6 = vweird.f32 %v285_v38  ;;  %v300_v53 = vand.u32 2147483648, %v285_v38 }
  0x18   :  { %553 = vrcp.f32 %v743_v40  ;;  %v307_v41 = vmul.f32 %v542_v32, %v306_v39  ;;  %v746_v47 = vadd.f32 1.0, %v550_v43  ;;  %v298_v56 = vand.u32 2147483647, %v285_v38 }
  0x19   :  { %555 = vrcp.f32 %v288_v44  ;;  %v301_v62 = vor.u32 1.1754944e-38, %v300_v53  ;;  %vm374_vm11 = vweird.f32 %v743_v40  ;;  %v380_v6 = vand.u32 2147483648, %v743_v40 }
  0x1a   :  { %v308_v49 = vadd.f32 %v542_v32, %v307_v41  ;;  %557 = vrcp.f32 %v746_v47  ;;  %vm299_vm10 = vcmp.eq.f32.partialorder %v298_v56, 8.507059e+37  ;;  %vm339_vm12 = vweird.f32 %v288_v44 }
  0x1b   :  { %v343_v13 = vand.u32 2147483647, %v288_v44  ;;  %v345_v14 = vand.u32 2147483648, %v288_v44  ;;  %v378_v22 = vand.u32 2147483647, %v743_v40  ;;  %vm324_vm15 = vweird.f32 %v746_v47 }
  0x1c   :  { %v312_v59 = vsel %vm750_vm5, %v542_v32, %v308_v49  ;;  %v330_v23 = vand.u32 2147483648, %v746_v47  ;;  %v328_v27 = vand.u32 2147483647, %v746_v47  ;;  %v381_v29 = vor.u32 1.1754944e-38, %v380_v6 }
  0x1d   :  { %v552_v45 = vpop.eup %551  ;;  %v317_v4 = vsel %vm314_vm8, %v316_v57, %v312_v59  ;;  %v346_v28 = vor.u32 1.1754944e-38, %v345_v14  ;;  %vm344_vm5 = vcmp.eq.f32.partialorder %v343_v13, 8.507059e+37 }
  0x1e   :  { %v748_v48 = vpop.eup %553  ;;  %v290_v51 = vmul.f32 %v552_v45, %v285_v38  ;;  %vm295_vm7 = vweird.f32 %v552_v45  ;;  %v331_v33 = vor.u32 1.1754944e-38, %v330_v23  ;;  %vm329_vm8 = vcmp.eq.f32.partialorder %v328_v27, 8.507059e+37 }
  0x1f   :  { %v370_v54 = vmul.f32 %v748_v48, %v743_v40  ;;  %vm759_vm9 = vmor %vm294_vm6, %vm295_vm7  ;;  %v556_v63 = vpop.eup %555  ;;  %vm375_vm13 = vweird.f32 %v748_v48  ;;  %vm379_vm6 = vcmp.eq.f32.partialorder %v378_v22, 8.507059e+37 }
  0x20   :  { %v291_v55 = vsub.f32 1.0, %v290_v51  ;;  %v335_v7 = vmul.f32 %v556_v63, %v288_v44  ;;  %v558_v8 = vpop.eup %557  ;;  %vm340_vm14 = vweird.f32 %v556_v63  ;;  %vm776_vm2 = vmor %vm374_vm11, %vm375_vm13 }
  0x21   :  { %v371_v58 = vsub.f32 1.0, %v370_v54  ;;  %v320_v17 = vmul.f32 %v558_v8, %v746_v47  ;;  %vm325_vm3 = vweird.f32 %v558_v8  ;;  %vm341_vm4 = vmor %vm339_vm12, %vm340_vm14 }
  0x22   :  { %v292_v60 = vmul.f32 %v552_v45, %v291_v55  ;;  %v336_v16 = vsub.f32 1.0, %v335_v7  ;;  %vm326_vm7 = vmor %vm324_vm15, %vm325_vm3  ;;  %vm121_vm15 = vcmp.lt.s32.totalorder %v675_v5, 12 }
  0x23   :  { %v372_v3 = vmul.f32 %v748_v48, %v371_v58  ;;  %v321_v26 = vsub.f32 1.0, %v320_v17 }
  0x24   :  { %v293_v2 = vadd.f32 %v552_v45, %v292_v60  ;;  %v337_v25 = vmul.f32 %v556_v63, %v336_v16 }
  0x25   :  { %v373_v19 = vadd.f32 %v748_v48, %v372_v3  ;;  %v322_v31 = vmul.f32 %v558_v8, %v321_v26 }
  0x26   :  { %v297_v12 = vsel %vm759_vm9, %v552_v45, %v293_v2  ;;  %v338_v30 = vadd.f32 %v556_v63, %v337_v25 }
  0x27   :  { %v302_v15 = vsel %vm299_vm10, %v301_v62, %v297_v12  ;;  %v377_v32 = vsel %vm776_vm2, %v748_v48, %v373_v19  ;;  %v323_v35 = vadd.f32 %v558_v8, %v322_v31 }
  0x28   :  { %468 = vrot.lane.b32.xlu2 %v302_v15, %s629_s2  ;;  %v342_v34 = vsel %vm341_vm4, %v556_v63, %v338_v30  ;;  %v382_v37 = vsel %vm379_vm6, %v381_v29, %v377_v32 }
  0x29   :  { %v347_v36 = vsel %vm344_vm5, %v346_v28, %v342_v34  ;;  %v327_v38 = vsel %vm326_vm7, %v558_v8, %v323_v35 }
  0x2a   :  { %v332_v39 = vsel %vm329_vm8, %v331_v33, %v327_v38 }
  0x2b   :  { %472 = vrot.lane.b32.xlu0 %v332_v39, %s629_s2 }
  0x2c   :  { %470 = vrot.lane.b32.xlu1 %v317_v4, %s629_s2 }
  0x30   :  { %474 = vrot.lane.b32.xlu2 %v347_v36, %s629_s2 }
  0x34   :  { %489 = vrot.lane.b32.xlu1 %v382_v37, %s630_s13 }
  0x76   :  { %v31_v40 = vpop.xlane.xlu1 %30  ;;  %v25_v41 = vpop.xlane.xlu0 %24 }
  0x77   :  { %v37_v42 = vsub.f32 %v664_v0, %v31_v40  ;;  %v35_v43 = vsub.f32 %v669_v1, %v25_v41 }
  0x79   :  { %v43_v44 = vmul.f32 1.442695, %v37_v42  ;;  %v39_v45 = vmul.f32 1.442695, %v35_v43 }
  0x7a   :  { %v175_v46 = vpop.xlane.xlu2 %174 }
  0x7b   :  { %559 = vpow2.f32 %v43_v44  ;;  %v185_v49 = vsub.f32 %v696_v11, %v175_v46 }
  0x7c   :  { %561 = vpow2.f32 %v39_v45 }
  0x7d   :  { %v189_v55 = vmul.f32 1.442695, %v185_v49 }
  0x7e   :  { %v34_v47 = vpop.xlane.xlu1 %33  ;;  %v28_v48 = vpop.xlane.xlu0 %27 }
  0x7f   :  { %v38_v50 = vsub.f32 %v687_v9, %v34_v47  ;;  %v36_v51 = vsub.f32 %v692_v10, %v28_v48 }
  0x81   :  { %v793_v52 = vpop.eup %559  ;;  %v45_v53 = vmul.f32 1.442695, %v38_v50  ;;  %v41_v54 = vmul.f32 1.442695, %v36_v51 }
  0x82   :  { %v795_v0 = vpop.eup %561  ;;  %v53_v1 = vsel %vm22_vm0, %v793_v52, 0.0  ;;  %v178_v56 = vpop.xlane.xlu2 %177 }
  0x83   :  { %563 = vpow2.f32 %v45_v53  ;;  %54 = vadd.xlane.f32.xlu1 %v53_v1  ;;  %v47_v11 = vsel %vm22_vm0, %v795_v0, 0.0  ;;  %v186_v9 = vsub.f32 %v715_v18, %v178_v56 }
  0x84   :  { %565 = vpow2.f32 %v41_v54  ;;  %48 = vadd.xlane.f32.xlu2 %v47_v11 }
  0x85   :  { %v191_v10 = vmul.f32 1.442695, %v186_v9  ;;  %567 = vpow2.f32 %v189_v55 }
  0x86   :  { %v181_v57 = vpop.xlane.xlu0 %180  ;;  %v184_v58 = vpop.xlane.xlu1 %183 }
  0x87   :  { %v187_v59 = vsub.f32 %v719_v20, %v181_v57  ;;  %569 = vpow2.f32 %v191_v10  ;;  %v188_v60 = vsub.f32 %v723_v21, %v184_v58 }
  0x89   :  { %v804_v61 = vpop.eup %563  ;;  %v193_v62 = vmul.f32 1.442695, %v187_v59  ;;  %v195_v3 = vmul.f32 1.442695, %v188_v60 }
  0x8a   :  { %v806_v63 = vpop.eup %565  ;;  %v56_v2 = vsel %vm22_vm0, %v804_v61, 0.0  ;;  %v830_v15 = vpop.permute.xlu2 %468 }
  0x8b   :  { %571 = vpow2.f32 %v193_v62  ;;  %v50_v18 = vsel %vm22_vm0, %v806_v63, 0.0  ;;  %v812_v4 = vpop.eup %567 }
  0x8c   :  { %57 = vadd.xlane.f32.xlu2 %v56_v2  ;;  %51 = vadd.xlane.f32.xlu0 %v50_v18  ;;  %573 = vpow2.f32 %v195_v3  ;;  %v197_v7 = vsel %vm172_vm1, %v812_v4, 0.0 }
  0x8d   :  { %v814_v20 = vpop.eup %569 }
  0x8e   :  { %v200_v21 = vsel %vm172_vm1, %v814_v20, 0.0 }
  0x8f   :  { %201 = vadd.xlane.f32.xlu1 %v200_v21 }
  0x91   :  { %v818_v6 = vpop.eup %571 }
  0x92   :  { %v203_v8 = vsel %vm172_vm1, %v818_v6, 0.0  ;;  %v824_v12 = vpop.eup %573  ;;  %v834_v17 = vpop.permute.xlu2 %474 }
  0x93   :  { %v206_v13 = vsel %vm172_vm1, %v824_v12, 0.0 }
  0x94   :  { %198 = vadd.xlane.f32.xlu0 %v197_v7  ;;  %204 = vadd.xlane.f32.xlu2 %v203_v8 }
  0x9c   :  { %207 = vadd.xlane.f32.xlu0 %v206_v13 }
  0x9d   :  { %v836_v22 = vpop.permute.xlu0 %472 }
  0x9e   :  { %v828_v14 = vpop.permute.xlu1 %470 }
  0xa6   :  { %v832_v16 = vpop.permute.xlu1 %489 }
  0xf6   :  { %v55_v19 = vpop.xlane.xlu1 %54 }
  0xf7   :  { %575 = vrcp.f32 %v55_v19  ;;  %v49_v23 = vpop.xlane.xlu2 %48  ;;  %v98_v31 = vand.u32 2147483648, %v55_v19  ;;  %v96_v34 = vand.u32 2147483647, %v55_v19  ;;  %vm92_vm10 = vweird.f32 %v55_v19 }
  0xf8   :  { %577 = vrcp.f32 %v49_v23  ;;  %v70_v36 = vand.u32 2147483648, %v49_v23  ;;  %vm64_vm11 = vweird.f32 %v49_v23  ;;  %v68_v39 = vand.u32 2147483647, %v49_v23 }
  0xf9   :  { %v99_v40 = vor.u32 1.1754944e-38, %v98_v31  ;;  %vm97_vm14 = vcmp.eq.f32.partialorder %v96_v34, 8.507059e+37 }
  0xfa   :  { %v71_v51 = vor.u32 1.1754944e-38, %v70_v36  ;;  %vm69_vm3 = vcmp.eq.f32.partialorder %v68_v39, 8.507059e+37 }
  0xfd   :  { %v576_v24 = vpop.eup %575 }
  0xfe   :  { %v578_v25 = vpop.eup %577  ;;  %v88_v26 = vmul.f32 %v576_v24, %v55_v19  ;;  %vm93_vm1 = vweird.f32 %v576_v24 }
  0xff   :  { %v60_v27 = vmul.f32 %v578_v25, %v49_v23  ;;  %v838_v28 = vpop.xlane.xlu2 %57  ;;  %v840_v29 = vpop.xlane.xlu0 %51  ;;  %vm65_vm9 = vweird.f32 %v578_v25  ;;  %vm94_vm12 = vmor %vm92_vm10, %vm93_vm1 }
 0x100   :  { %v89_v30 = vsub.f32 1.0, %v88_v26  ;;  %579 = vrcp.f32 %v838_v28  ;;  %vm844_vm13 = vmor %vm64_vm11, %vm65_vm9  ;;  %v112_v49 = vand.u32 2147483648, %v838_v28  ;;  %vm106_vm2 = vweird.f32 %v838_v28 }
 0x101   :  { %v61_v32 = vsub.f32 1.0, %v60_v27  ;;  %581 = vrcp.f32 %v840_v29  ;;  %v84_v1 = vand.u32 2147483648, %v840_v29  ;;  %v110_v57 = vand.u32 2147483647, %v838_v28 }
 0x102   :  { %v90_v33 = vmul.f32 %v576_v24, %v89_v30  ;;  %v864_v59 = vpop.xlane.xlu1 %201  ;;  %v113_v62 = vor.u32 1.1754944e-38, %v112_v49  ;;  %v82_v2 = vand.u32 2147483647, %v840_v29  ;;  %vm78_vm7 = vweird.f32 %v840_v29 }
 0x103   :  { %v62_v35 = vmul.f32 %v578_v25, %v61_v32  ;;  %vm111_vm8 = vcmp.eq.f32.partialorder %v110_v57, 8.507059e+37  ;;  %v85_v23 = vor.u32 1.1754944e-38, %v84_v1 }
 0x104   :  { %v91_v37 = vadd.f32 %v576_v24, %v90_v33  ;;  %vm83_vm9 = vcmp.eq.f32.partialorder %v82_v2, 8.507059e+37 }
 0x105   :  { %v63_v38 = vadd.f32 %v578_v25, %v62_v35 }
 0x106   :  { %v580_v41 = vpop.eup %579  ;;  %v95_v43 = vsel %vm94_vm12, %v576_v24, %v91_v37 }
 0x107   :  { %v582_v44 = vpop.eup %581  ;;  %v102_v45 = vmul.f32 %v580_v41, %v838_v28  ;;  %v849_v46 = vpop.xlane.xlu0 %198  ;;  %v67_v47 = vsel %vm844_vm13, %v578_v25, %v63_v38  ;;  %v100_v48 = vsel %vm97_vm14, %v99_v40, %v95_v43  ;;  %vm107_vm4 = vweird.f32 %v580_v41 }
 0x108   :  { %v74_v50 = vmul.f32 %v582_v44, %v840_v29  ;;  %583 = vrcp.f32 %v849_v46  ;;  %v72_v55 = vsel %vm69_vm3, %v71_v51, %v67_v47  ;;  %v117_v56 = vmul.f32 %v793_v52, %v100_v48  ;;  %v860_v9 = vpop.xlane.xlu2 %204  ;;  %vm108_vm6 = vmor %vm106_vm2, %vm107_vm4 }
 0x109   :  { %v103_v53 = vsub.f32 1.0, %v102_v45  ;;  %v115_v10 = vmul.f32 %v795_v0, %v72_v55  ;;  %vm79_vm5 = vweird.f32 %v582_v44  ;;  %585 = vrcp.f32 %v860_v9 }
 0x10a   :  { %v75_v54 = vsub.f32 1.0, %v74_v50  ;;  %v868_v60 = vsel %vm121_vm15, %v117_v56, -1.0  ;;  %587 = vrcp.f32 %v864_v59  ;;  %vm80_vm1 = vmor %vm78_vm7, %vm79_vm5  ;;  %vm214_vm10 = vweird.f32 %v849_v46 }
 0x10b   :  { %v104_v11 = vmul.f32 %v580_v41, %v103_v53  ;;  %v873_v52 = vsel %vm121_vm15, %v115_v10, -1.0  ;;  %v132_v0 = vsel %vm22_vm0, %v868_v60, -inf  ;;  %v220_v34 = vand.u32 2147483648, %v849_v46 }
 0x10c   :  { %v76_v58 = vmul.f32 %v582_v44, %v75_v54  ;;  %v126_v3 = vsel %vm22_vm0, %v873_v52, -inf  ;;  %133 = vmax.xlane.f32.xlu0 %v132_v0  ;;  %v218_v38 = vand.u32 2147483647, %v849_v46  ;;  %v631_v45 = vmov 0.0  }
 0x10d   :  { %v105_v18 = vadd.f32 %v580_v41, %v104_v11  ;;  %127 = vmax.xlane.f32.xlu1 %v126_v3  ;;  %v221_v43 = vor.u32 1.1754944e-38, %v220_v34  ;;  %429 = vst [vmem:[#allocation2] sm:$0xff] %v631_v45  ;;  %vm228_vm4 = vweird.f32 %v864_v59  ;;  %vm242_vm5 = vweird.f32 %v860_v9  ;;  %v351_v34 = vld [vmem:[%s1032_s3 + $0x10] sm:$0xff] }
 0x10e   :  { %v77_v21 = vadd.f32 %v582_v44, %v76_v58  ;;  %v584_v7 = vpop.eup %583  ;;  %vm219_vm13 = vcmp.eq.f32.partialorder %v218_v38, 8.507059e+37  ;;  %430 = vst [vmem:[#allocation2 + $0x8] sm:$0xff] %v631_v45  ;;  %v248_v57 = vand.u32 2147483648, %v860_v9  ;;  %v246_v2 = vand.u32 2147483647, %v860_v9 }
 0x10f   :  { %v884_v8 = vpop.xlane.xlu0 %207  ;;  %v109_v13 = vsel %vm108_vm6, %v580_v41, %v105_v18  ;;  %v210_v19 = vmul.f32 %v584_v7, %v849_v46  ;;  %v891_v30 = vpop.eup %585  ;;  %vm215_vm11 = vweird.f32 %v584_v7  ;;  %431 = vst [vmem:[#allocation2 + $0x10] sm:$0xff] %v631_v45  ;;  %v232_v18 = vand.u32 2147483647, %v864_v59 }
 0x110   :  { %589 = vrcp.f32 %v884_v8  ;;  %v114_v24 = vsel %vm111_vm8, %v113_v62, %v109_v13  ;;  %v81_v25 = vsel %vm80_vm1, %v582_v44, %v77_v21  ;;  %v898_v33 = vpop.eup %587  ;;  %v238_v39 = vmul.f32 %v891_v30, %v860_v9  ;;  %vm915_vm12 = vmor %vm214_vm10, %vm215_vm11  ;;  %432 = vst [vmem:[#allocation2 + $0x18] sm:$0xff] %v631_v45 }
 0x111   :  { %v211_v26 = vsub.f32 1.0, %v210_v19  ;;  %v118_v27 = vmul.f32 %v804_v61, %v114_v24  ;;  %v86_v28 = vsel %vm83_vm9, %v85_v23, %v81_v25  ;;  %v224_v42 = vmul.f32 %v898_v33, %v864_v59 }
 0x112   :  { %v116_v29 = vmul.f32 %v806_v63, %v86_v28  ;;  %v239_v48 = vsub.f32 1.0, %v238_v39  ;;  %vm256_vm14 = vweird.f32 %v884_v8  ;;  %v262_v50 = vand.u32 2147483648, %v884_v8 }
 0x113   :  { %v212_v31 = vmul.f32 %v584_v7, %v211_v26  ;;  %v896_v32 = vsel %vm121_vm15, %v118_v27, -1.0  ;;  %v225_v46 = vsub.f32 1.0, %v224_v42  ;;  %v260_v54 = vand.u32 2147483647, %v884_v8 }
 0x114   :  { %v135_v61 = vsel %vm22_vm0, %v896_v32, -inf  ;;  %v905_v63 = vsel %vm121_vm15, %v116_v29, -1.0  ;;  %v240_v1 = vmul.f32 %v891_v30, %v239_v48  ;;  %v263_v10 = vor.u32 1.1754944e-38, %v262_v50 }
 0x115   :  { %v129_v36 = vsel %vm22_vm0, %v905_v63, -inf  ;;  %v213_v37 = vadd.f32 %v584_v7, %v212_v31  ;;  %136 = vmax.xlane.f32.xlu1 %v135_v61  ;;  %v226_v56 = vmul.f32 %v898_v33, %v225_v46  ;;  %vm243_vm6 = vweird.f32 %v891_v30 }
 0x116   :  { %v590_v35 = vpop.eup %589  ;;  %130 = vmax.xlane.f32.xlu2 %v129_v36  ;;  %vm261_vm7 = vcmp.eq.f32.partialorder %v260_v54, 8.507059e+37  ;;  %vm229_vm8 = vweird.f32 %v898_v33  ;;  %v234_v62 = vand.u32 2147483648, %v864_v59  ;;  %vm244_vm1 = vmor %vm242_vm5, %vm243_vm6  ;;  %v249_v21 = vor.u32 1.1754944e-38, %v248_v57  ;;  %v352_v59 = vld [vmem:[%s1032_s3 + $0x18] sm:$0xff] }
 0x117   :  { %v252_v40 = vmul.f32 %v590_v35, %v884_v8  ;;  %v217_v47 = vsel %vm915_vm12, %v584_v7, %v213_v37  ;;  %vm257_vm2 = vweird.f32 %v590_v35  ;;  %v227_v0 = vadd.f32 %v898_v33, %v226_v56  ;;  %vm230_vm9 = vmor %vm228_vm4, %vm229_vm8 }
 0x118   :  { %v222_v51 = vsel %vm219_vm13, %v221_v43, %v217_v47  ;;  %vm927_vm3 = vmor %vm256_vm14, %vm257_vm2  ;;  %v235_v7 = vor.u32 1.1754944e-38, %v234_v62  ;;  %vm247_vm10 = vcmp.eq.f32.partialorder %v246_v2, 8.507059e+37  ;;  %vm233_vm11 = vcmp.eq.f32.partialorder %v232_v18, 8.507059e+37 }
 0x119   :  { %v253_v44 = vsub.f32 1.0, %v252_v40  ;;  %v265_v11 = vmul.f32 %v812_v4, %v222_v51  ;;  %v241_v4 = vadd.f32 %v891_v30, %v240_v1  ;;  %v231_v19 = vsel %vm230_vm9, %v898_v33, %v227_v0 }
 0x11a   :  { %v236_v23 = vsel %vm233_vm11, %v235_v7, %v231_v19  ;;  %v531_v26 = vmul.f32 -1.442695, %v352_v59  ;;  %vm433_vm12 = vcmask 7168   ;;  %v530_v37 = vmul.f32 -1.442695, %v351_v34 }
 0x11b   :  { %v254_v49 = vmul.f32 %v590_v35, %v253_v44  ;;  %v245_v8 = vsel %vm244_vm1, %v891_v30, %v241_v4  ;;  %v266_v25 = vmul.f32 %v814_v20, %v236_v23  ;;  %v146_v20 = vcvt.s32.f32 %v675_v5 }
 0x11c   :  { %v250_v9 = vsel %vm247_vm10, %v249_v21, %v245_v8  ;;  %591 = vpow2.f32 %v531_v26 }
 0x11d   :  { %v255_v53 = vadd.f32 %v590_v35, %v254_v49  ;;  %v267_v24 = vmul.f32 %v818_v6, %v250_v9 }
 0x11f   :  { %v259_v58 = vsel %vm927_vm3, %v590_v35, %v255_v53 }
 0x120   :  { %447 = vrot.lane.b32.xlu0 %v265_v11, %s632_s14  ;;  %v264_v3 = vsel %vm261_vm7, %v263_v10, %v259_v58 }
 0x121   :  { %v268_v13 = vmul.f32 %v824_v12, %v264_v3  ;;  %v350_v12 = vld [vmem:[%s1032_s3 + $0x8] sm:$0xff]  ;;  %s633_s3 = smov [#allocation2]  }
 0x122   :  { %v529_v27 = vmul.f32 -1.442695, %v350_v12  ;;  %v592_v28 = vpop.eup %591  ;;  %s510_s21 = sshll.u32 %s633_s3, 4  ;;  %s511_s21 = int_to_ptr.vmem [resolvable:$true] %s510_s21 }
 0x123   :  { %v958_v29 = vadd.f32 1.0, %v592_v28 }
 0x124   :  { %593 = vpow2.f32 %v529_v27 }
 0x125   :  { %595 = vrcp.f32 %v958_v29  ;;  %vm419_vm8 = vweird.f32 %v958_v29  ;;  %v425_v5 = vand.u32 2147483648, %v958_v29  ;;  %v423_v51 = vand.u32 2147483647, %v958_v29 }
 0x127   :  { %v426_v55 = vor.u32 1.1754944e-38, %v425_v5  ;;  %vm424_vm10 = vcmp.eq.f32.partialorder %v423_v51, 8.507059e+37 }
 0x128   :  { %453 = vrot.lane.b32.xlu0 %v268_v13, %s632_s14 }
 0x12a   :  { %v594_v6 = vpop.eup %593 }
 0x12b   :  { %v962_v31 = vadd.f32 1.0, %v594_v6  ;;  %v596_v36 = vpop.eup %595 }
 0x12c   :  { %v415_v38 = vmul.f32 %v596_v36, %v958_v29  ;;  %vm420_vm1 = vweird.f32 %v596_v36 }
 0x12d   :  { %597 = vrcp.f32 %v962_v31  ;;  %v395_v11 = vand.u32 2147483648, %v962_v31  ;;  %v393_v58 = vand.u32 2147483647, %v962_v31 }
 0x12e   :  { %451 = vrot.lane.b32.xlu2 %v267_v24, %s632_s14  ;;  %449 = vrot.lane.b32.xlu1 %v266_v25, %s632_s14  ;;  %599 = vpow2.f32 %v530_v37  ;;  %v416_v43 = vsub.f32 1.0, %v415_v38 }
 0x12f   :  { %v396_v18 = vor.u32 1.1754944e-38, %v395_v11 }
 0x130   :  { %v417_v49 = vmul.f32 %v596_v36, %v416_v43 }
 0x132   :  { %v418_v50 = vadd.f32 %v596_v36, %v417_v49 }
 0x133   :  { %v598_v41 = vpop.eup %597 }
 0x134   :  { %v600_v44 = vpop.eup %599  ;;  %vm390_vm9 = vweird.f32 %v598_v41 }
 0x17f   :  { %v134_v30 = vpop.xlane.xlu0 %133 }
 0x180   :  { %v128_v33 = vpop.xlane.xlu1 %127  ;;  %vm140_vm13 = vcmp.eq.f32.partialorder %v868_v60, %v134_v30  ;;  %436 = vst.msk [vmem:[#allocation2 + $0x10] sm:$0xff] %vm433_vm12, %v134_v30 }
 0x181   :  { %vm138_vm14 = vcmp.eq.f32.partialorder %v873_v52, %v128_v33  ;;  %434 = vst.msk [vmem:[#allocation2] sm:$0xff] %vm433_vm12, %v128_v33  ;;  %vm144_vm2 = vmand %vm140_vm13, %vm121_vm15 }
 0x182   :  { %vm142_vm3 = vmand %vm138_vm14, %vm121_vm15  ;;  %v149_v61 = vsel %vm144_vm2, %v146_v20, 13.0  ;;  %vm394_vm14 = vcmp.eq.f32.partialorder %v393_v58, 8.507059e+37 }
 0x183   :  { %v147_v35 = vsel %vm142_vm3, %v146_v20, 13.0  ;;  %v157_v60 = vsel %vm22_vm0, %v149_v61, inf }
 0x184   :  { %v151_v52 = vsel %vm22_vm0, %v147_v35, inf  ;;  %158 = vmin.xlane.f32.xlu1 %v157_v60 }
 0x185   :  { %152 = vmin.xlane.f32.xlu2 %v151_v52 }
 0x188   :  { %v137_v39 = vpop.xlane.xlu1 %136 }
 0x189   :  { %v131_v40 = vpop.xlane.xlu2 %130  ;;  %vm141_vm4 = vcmp.eq.f32.partialorder %v896_v32, %v137_v39  ;;  %437 = vst.msk [vmem:[#allocation2 + $0x18] sm:$0xff] %vm433_vm12, %v137_v39  ;;  %v385_v32 = vmul.f32 %v598_v41, %v962_v31 }
 0x18a   :  { %vm139_vm5 = vcmp.eq.f32.partialorder %v905_v63, %v131_v40  ;;  %435 = vst.msk [vmem:[#allocation2 + $0x8] sm:$0xff] %vm433_vm12, %v131_v40  ;;  %vm145_vm6 = vmand %vm141_vm4, %vm121_vm15  ;;  %v367_v63 = vadd.f32 1.0, %v600_v44  ;;  %vm438_vm4 = vcmask 15368  }
 0x18b   :  { %v150_v42 = vsel %vm145_vm6, %v146_v20, 13.0  ;;  %vm143_vm7 = vmand %vm139_vm5, %vm121_vm15  ;;  %v386_v46 = vsub.f32 1.0, %v385_v32  ;;  %vm459_vm5 = vcmask 48144   ;;  %vm480_vm6 = vcmask 97328  }
 0x18c   :  { %v160_v45 = vsel %vm22_vm0, %v150_v42, inf  ;;  %v148_v47 = vsel %vm143_vm7, %v146_v20, 13.0  ;;  %601 = vrcp.f32 %v367_v63  ;;  %vm993_vm15 = vmor %vm419_vm8, %vm420_vm1  ;;  %vm404_vm12 = vweird.f32 %v367_v63 }
 0x18d   :  { %161 = vmin.xlane.f32.xlu2 %v160_v45  ;;  %v154_v48 = vsel %vm22_vm0, %v148_v47, inf  ;;  %v387_v53 = vmul.f32 %v598_v41, %v386_v46  ;;  %vm389_vm0 = vweird.f32 %v962_v31  ;;  %v422_v10 = vsel %vm993_vm15, %v596_v36, %v418_v50 }
 0x18e   :  { %155 = vmin.xlane.f32.xlu0 %v154_v48  ;;  %vm391_vm11 = vmor %vm389_vm0, %vm390_vm9  ;;  %v427_v4 = vsel %vm424_vm10, %v426_v55, %v422_v10  ;;  %v410_v0 = vand.u32 2147483648, %v367_v63  ;;  %v408_v3 = vand.u32 2147483647, %v367_v63  ;;  %vm501_vm7 = vcmask 236640  }
 0x18f   :  { %v388_v57 = vadd.f32 %v598_v41, %v387_v53 }
 0x190   :  { %v411_v8 = vor.u32 1.1754944e-38, %v410_v0  ;;  %vm409_vm3 = vcmp.eq.f32.partialorder %v408_v3, 8.507059e+37 }
 0x191   :  { %v392_v21 = vsel %vm391_vm11, %v598_v41, %v388_v57  ;;  %v452_v25 = vpop.permute.xlu2 %451 }
 0x192   :  { %v602_v1 = vpop.eup %601  ;;  %v397_v13 = vsel %vm394_vm14, %v396_v18, %v392_v21  ;;  %v448_v23 = vpop.permute.xlu0 %447 }
 0x193   :  { %v400_v56 = vmul.f32 %v602_v1, %v367_v63  ;;  %vm405_vm13 = vweird.f32 %v602_v1 }
 0x194   :  { %vm406_vm2 = vmor %vm404_vm12, %vm405_vm13 }
 0x195   :  { %v401_v62 = vsub.f32 1.0, %v400_v56 }
 0x197   :  { %v402_v2 = vmul.f32 %v602_v1, %v401_v62 }
 0x199   :  { %v403_v7 = vadd.f32 %v602_v1, %v402_v2 }
 0x19a   :  { %v454_v12 = vpop.permute.xlu0 %453 }
 0x19b   :  { %v407_v19 = vsel %vm406_vm2, %v602_v1, %v403_v7 }
 0x19c   :  { %v412_v9 = vsel %vm409_vm3, %v411_v8, %v407_v19 }
 0x19d   :  { %495 = vrot.lane.b32.xlu1 %v427_v4, %s630_s13 }
 0x1a0   :  { %v450_v24 = vpop.permute.xlu1 %449 }
 0x1a2   :  { %491 = vrot.lane.b32.xlu0 %v397_v13, %s630_s13 }
 0x1a5   :  { %493 = vrot.lane.b32.xlu2 %v412_v9, %s630_s13 }
 0x1f7   :  { %v159_v59 = vpop.xlane.xlu1 %158 }
 0x1f8   :  { %v153_v26 = vpop.xlane.xlu2 %152  ;;  %441 = vst.msk [vmem:[#allocation2 + $0x10] sm:$0xff] %vm438_vm4, %v159_v59 }
 0x1f9   :  { %439 = vst.msk [vmem:[#allocation2] sm:$0xff] %vm438_vm4, %v153_v26 }
 0x1fa   :  { %460 = vst.msk [vmem:[#allocation2] sm:$0xff] %vm459_vm5, %v448_v23 }
 0x1fb   :  { %481 = vst.msk [vmem:[#allocation2] sm:$0xff] %vm480_vm6, %v830_v15 }
 0x1fc   :  { %462 = vst.msk [vmem:[#allocation2 + $0x10] sm:$0xff] %vm459_vm5, %v452_v25 }
 0x1fd   :  { %483 = vst.msk [vmem:[#allocation2 + $0x10] sm:$0xff] %vm480_vm6, %v836_v22 }
 0x1fe   :  { %502 = vst.msk [vmem:[#allocation2] sm:$0xff] %vm501_vm7, %v832_v16 }
 0x200   :  { %v162_v27 = vpop.xlane.xlu2 %161 }
 0x201   :  { %442 = vst.msk [vmem:[#allocation2 + $0x18] sm:$0xff] %vm438_vm4, %v162_v27  ;;  %v156_v28 = vpop.xlane.xlu0 %155 }
 0x202   :  { %463 = vst.msk [vmem:[#allocation2 + $0x18] sm:$0xff] %vm459_vm5, %v454_v12 }
 0x203   :  { %484 = vst.msk [vmem:[#allocation2 + $0x18] sm:$0xff] %vm480_vm6, %v834_v17 }
 0x204   :  { %440 = vst.msk [vmem:[#allocation2 + $0x8] sm:$0xff] %vm438_vm4, %v156_v28 }
 0x205   :  { %461 = vst.msk [vmem:[#allocation2 + $0x8] sm:$0xff] %vm459_vm5, %v450_v24 }
 0x206   :  { %482 = vst.msk [vmem:[#allocation2 + $0x8] sm:$0xff] %vm480_vm6, %v828_v14 }
 0x208   :  { %v494_v15 = vpop.permute.xlu2 %493 }
 0x209   :  { %504 = vst.msk [vmem:[#allocation2 + $0x10] sm:$0xff] %vm501_vm7, %v494_v15 }
 0x20f   :  { %v496_v16 = vpop.permute.xlu1 %495 }
 0x210   :  { %505 = vst.msk [vmem:[#allocation2 + $0x18] sm:$0xff] %vm501_vm7, %v496_v16 }
 0x214   :  { %v492_v17 = vpop.permute.xlu0 %491 }
 0x215   :  { %503 = vst.msk [vmem:[#allocation2 + $0x8] sm:$0xff] %vm501_vm7, %v492_v17 }
 0x216   :  { %518 = dma.vmem_to_hbm [thread:$0]  %s511_s21, 512, %s513_s24, [#allocation3], %s634_s25, %s634_s25, %s635_s26  }
 0x217   :  { %627 = dma.done.wait [#allocation3], 512  }
 0x218   :  { %628 = vsyncadd [#allocation3], 4294966784 }
 0x219   :  { %523 = vsyncpa [#allocation3], 1 }

</bundles_post_ra>
